<compile_context>
chip_gen: v5e
topology: v5e:2x2
jax: 0.10.0
libtpu: 0.0.40
codegen_flags: <defaults>
</compile_context>

<pallas_src>
import functools

import jax
import jax.numpy as jnp
from jax import lax
from jax.experimental import pallas as pl
from jax.experimental.pallas import tpu as pltpu

LANES = 128
MAX_BLOCK_ROWS = 1024  # 1024 x 128 f32 tile = 512 KiB per input per grid step


def _round_up(x, m):
    return ((x + m - 1) // m) * m


def _dice_partial_kernel(x_ref, t_ref, out_ref, *, block_rows, rows, needs_mask):
    """Fold one (block_rows, 128) tile into an (8, 128) partial per sum.

    out_ref : (1, 3, 8, 128) f32 block — [intersection, sum_x, sum_t] partials.
    Only VPU elementwise work here; the cross-lane/sublane reduce happens once
    in the wrapper on the tiny partial array.
    """
    x = x_ref[...].astype(jnp.float32)
    t = t_ref[...].astype(jnp.float32)

    if needs_mask:
        # Mask rows that fall past the end of the (row-padded) array: the last
        # grid block may read out-of-bounds garbage.  Row granularity is
        # enough because the sub-128 tail inside valid rows is zero-padded.
        row = lax.broadcasted_iota(jnp.int32, (block_rows, LANES), 0)
        valid = (pl.program_id(0) * block_rows + row) < rows
        x = jnp.where(valid, x, 0.0)
        t = jnp.where(valid, t, 0.0)

    xt = x * t
    sub = block_rows // 8
    # Reduce only along the leading (vreg) axis -> plain vreg-to-vreg VPU adds.
    out_ref[0, 0] = jnp.sum(xt.reshape(sub, 8, LANES), axis=0)
    out_ref[0, 1] = jnp.sum(x.reshape(sub, 8, LANES), axis=0)
    out_ref[0, 2] = jnp.sum(t.reshape(sub, 8, LANES), axis=0)


def dice_loss(inputs, targets, smooth=1.0):
    """Pallas-backed equivalent of DiceLoss.forward (smooth is honored)."""
    assert inputs.size == targets.size
    x = jnp.ravel(inputs)
    t = jnp.ravel(targets)

    # Keep floating dtypes as-is (bf16 halves HBM traffic); the kernel casts
    # to f32 for accumulation.  Non-float (bool/int) inputs get a simple cast.
    if not jnp.issubdtype(x.dtype, jnp.floating):
        x = x.astype(jnp.float32)
    if not jnp.issubdtype(t.dtype, jnp.floating):
        t = t.astype(jnp.float32)

    n = x.shape[0]
    padded = _round_up(max(n, 1), 8 * LANES)
    if padded != n:
        # Zero padding does not change any of the three sums.  Only triggered
        # when n is not a multiple of 1024 elements.
        x = jnp.pad(x, (0, padded - n))
        t = jnp.pad(t, (0, padded - n))

    rows = padded // LANES          # multiple of 8 by construction
    x2 = x.reshape(rows, LANES)
    t2 = t.reshape(rows, LANES)

    block_rows = min(MAX_BLOCK_ROWS, rows)   # never exceeds the array extent
    num_blocks = pl.cdiv(rows, block_rows)
    needs_mask = (rows % block_rows) != 0    # only the last block can be partial

    kernel = functools.partial(
        _dice_partial_kernel,
        block_rows=block_rows,
        rows=rows,
        needs_mask=needs_mask,
    )

    partial = pl.pallas_call(
        kernel,
        out_shape=jax.ShapeDtypeStruct((num_blocks, 3, 8, LANES), jnp.float32),
        grid=(num_blocks,),
        in_specs=[
            pl.BlockSpec((block_rows, LANES), lambda i: (i, 0)),
            pl.BlockSpec((block_rows, LANES), lambda i: (i, 0)),
        ],
        out_specs=pl.BlockSpec((1, 3, 8, LANES), lambda i: (i, 0, 0, 0)),
        compiler_params=pltpu.CompilerParams(
            dimension_semantics=("parallel",),
        ),
    )(x2, t2)

    # Final (tiny) reduction + dice formula in the wrapper: honors `smooth`
    # and keeps the in-kernel work VPU-only.
    sums = jnp.sum(partial, axis=(0, 2, 3))
    intersection, sum_x, sum_t = sums[0], sums[1], sums[2]
    dice = (2.0 * intersection + smooth) / (sum_x + sum_t + smooth)
    return 1.0 - dice


def dice_loss_ref(inputs, targets, smooth=1.0):
    x = jnp.ravel(inputs).astype(jnp.float32)
    t = jnp.ravel(targets).astype(jnp.float32)
    inter = jnp.sum(x * t)
    dice = (2.0 * inter + smooth) / (jnp.sum(x) + jnp.sum(t) + smooth)
    return 1.0 - dice


if __name__ == "__main__":
    key = jax.random.PRNGKey(0)
    k1, k2 = jax.random.split(key)
    # Typical segmentation setup: predicted probabilities and binary targets.
    shape = (2, 4, 16, 16)  # NCHW; flattened inside the loss
    inputs = jax.nn.sigmoid(jax.random.normal(k1, shape, dtype=jnp.float32))
    targets = (jax.random.uniform(k2, shape) > 0.5).astype(jnp.float32)

    out = dice_loss(inputs, targets)
    out = jax.block_until_ready(out)
    ref = dice_loss_ref(inputs, targets)
    assert jnp.allclose(out, ref, atol=1e-5, rtol=1e-5), (out, ref)

    # smooth is now honored (previous version hardcoded smooth=1).
    out2 = jax.block_until_ready(dice_loss(inputs, targets, smooth=2.0))
    ref2 = dice_loss_ref(inputs, targets, smooth=2.0)
    assert jnp.allclose(out2, ref2, atol=1e-5, rtol=1e-5), (out2, ref2)

    print("KERNEL_OK")
</pallas_src>

<mosaic_0001>
module attributes {stable_mosaic.version = 11 : i64} {
  func.func @_dice_partial_kernel(%arg0: i32, %arg1: memref<16x128xf32, #tpu.memory_space<vmem>>, %arg2: memref<16x128xf32, #tpu.memory_space<vmem>>, %arg3: memref<1x3x8x128xf32, #tpu.memory_space<vmem>>) attributes {dimension_semantics = [#tpu.dimension_semantics<parallel>], iteration_bounds = array<i64: 1>, scalar_prefetch = 0 : i64, scratch_operands = 0 : i64, tpu.core_type = #tpu.core_type<tc>, window_params = [{transform_indices = @transform_0, window_bounds = array<i64: 16, 128>}, {transform_indices = @transform_1, window_bounds = array<i64: 16, 128>}, {transform_indices = @transform_2, window_bounds = array<i64: 1, 3, 8, 128>}]} {
    %c0 = arith.constant 0 : index
    %c0_0 = arith.constant 0 : index
    %0 = vector.load %arg1[%c0, %c0_0] : memref<16x128xf32, #tpu.memory_space<vmem>>, vector<16x128xf32>
    %c0_1 = arith.constant 0 : index
    %c0_2 = arith.constant 0 : index
    %1 = vector.load %arg2[%c0_1, %c0_2] : memref<16x128xf32, #tpu.memory_space<vmem>>, vector<16x128xf32>
    %2 = arith.mulf %0, %1 : vector<16x128xf32>
    %3 = vector.shape_cast %2 : vector<16x128xf32> to vector<2x8x128xf32>
    %cst = arith.constant dense<0.000000e+00> : vector<8x128xf32>
    %4 = vector.multi_reduction <add>, %3, %cst [0] : vector<2x8x128xf32> to vector<8x128xf32>
    %c0_3 = arith.constant 0 : index
    %c0_4 = arith.constant 0 : index
    %c0_5 = arith.constant 0 : index
    %c0_6 = arith.constant 0 : index
    %5 = vector.load %arg3[%c0_3, %c0_4, %c0_5, %c0_6] : memref<1x3x8x128xf32, #tpu.memory_space<vmem>>, vector<1x1x8x128xf32>
    %6 = vector.shape_cast %5 : vector<1x1x8x128xf32> to vector<8x128xf32>
    %7 = vector.shape_cast %4 : vector<8x128xf32> to vector<1x1x8x128xf32>
    tpu.vector_store %arg3[%c0_3, %c0_4, %c0_5, %c0_6], %7 {strides = array<i32>} : memref<1x3x8x128xf32, #tpu.memory_space<vmem>>, vector<1x1x8x128xf32>,
    %8 = vector.shape_cast %0 : vector<16x128xf32> to vector<2x8x128xf32>
    %cst_7 = arith.constant dense<0.000000e+00> : vector<8x128xf32>
    %9 = vector.multi_reduction <add>, %8, %cst_7 [0] : vector<2x8x128xf32> to vector<8x128xf32>
    %c0_8 = arith.constant 0 : index
    %c1 = arith.constant 1 : index
    %c0_9 = arith.constant 0 : index
    %c0_10 = arith.constant 0 : index
    %10 = vector.load %arg3[%c0_8, %c1, %c0_9, %c0_10] : memref<1x3x8x128xf32, #tpu.memory_space<vmem>>, vector<1x1x8x128xf32>
    %11 = vector.shape_cast %10 : vector<1x1x8x128xf32> to vector<8x128xf32>
    %12 = vector.shape_cast %9 : vector<8x128xf32> to vector<1x1x8x128xf32>
    tpu.vector_store %arg3[%c0_8, %c1, %c0_9, %c0_10], %12 {strides = array<i32>} : memref<1x3x8x128xf32, #tpu.memory_space<vmem>>, vector<1x1x8x128xf32>,
    %13 = vector.shape_cast %1 : vector<16x128xf32> to vector<2x8x128xf32>
    %cst_11 = arith.constant dense<0.000000e+00> : vector<8x128xf32>
    %14 = vector.multi_reduction <add>, %13, %cst_11 [0] : vector<2x8x128xf32> to vector<8x128xf32>
    %c0_12 = arith.constant 0 : index
    %c2 = arith.constant 2 : index
    %c0_13 = arith.constant 0 : index
    %c0_14 = arith.constant 0 : index
    %15 = vector.load %arg3[%c0_12, %c2, %c0_13, %c0_14] : memref<1x3x8x128xf32, #tpu.memory_space<vmem>>, vector<1x1x8x128xf32>
    %16 = vector.shape_cast %15 : vector<1x1x8x128xf32> to vector<8x128xf32>
    %17 = vector.shape_cast %14 : vector<8x128xf32> to vector<1x1x8x128xf32>
    tpu.vector_store %arg3[%c0_12, %c2, %c0_13, %c0_14], %17 {strides = array<i32>} : memref<1x3x8x128xf32, #tpu.memory_space<vmem>>, vector<1x1x8x128xf32>,
    return
  }
  func.func @transform_0(%arg0: i32) -> (i32, i32) {
    %c0_i32 = arith.constant 0 : i32
    %c0_i32_0 = arith.constant 0 : i32
    return %arg0, %c0_i32 : i32, i32
  }
  func.func @transform_1(%arg0: i32) -> (i32, i32) {
    %c0_i32 = arith.constant 0 : i32
    %c0_i32_0 = arith.constant 0 : i32
    return %arg0, %c0_i32 : i32, i32
  }
  func.func @transform_2(%arg0: i32) -> (i32, i32, i32, i32) {
    %c0_i32 = arith.constant 0 : i32
    %c0_i32_0 = arith.constant 0 : i32
    %c0_i32_1 = arith.constant 0 : i32
    %c0_i32_2 = arith.constant 0 : i32
    return %arg0, %c0_i32, %c0_i32_0, %c0_i32_1 : i32, i32, i32, i32
  }
}

</mosaic_0001>

<bundles_post_ra>
// kernel: tpu_custom_call.1
= control target key start
LH: loop header
LB: loop body
LE: loop exit
PB: predicated region body
PF: predicated region fallthrough
CT: control target
= control target key end

     0   :  { %7 = vsyncpa [#allocation3], 0  ;;  %s199_s0 = inlined_call_operand.hbm [shape: f32[16,128], index: 0, kind: input, shape index: {}]   ;;  %s200_s1 = inlined_call_operand.hbm [shape: f32[16,128], index: 1, kind: input, shape index: {}]   ;;  %s201_s2 = inlined_call_operand.hbm [shape: f32[1,3,8,128], index: 2, kind: output, shape index: {}]  }
   0x1   :  { %8 = vsyncpa [#allocation6], 0 }
   0x2   :  { %9 = vsyncpa [#allocation4], 0  ;;  %s14_s11 = sshll.u32 %s199_s0, 4  ;;  %s161_s12 = smov [#allocation2]   ;;  %s15_s11 = int_to_ptr.hbm [resolvable:$true] %s14_s11 }
   0x3   :  { %s16_s13 = sshll.u32 %s161_s12, 4  ;;  %s27_s16 = sshll.u32 %s200_s1, 4  ;;  %s17_s13 = int_to_ptr.vmem [resolvable:$true] %s16_s13  ;;  %s28_s16 = int_to_ptr.hbm [resolvable:$true] %s27_s16 }
   0x4   :  { %s162_s17 = smov 128   ;;  %s163_s18 = smov 8  }
   0x5   :  { %22 = dma.hbm_to_vmem [thread:$0]  %s15_s11, 256, %s17_s13, [#allocation3], %s162_s17, %s162_s17, %s163_s18  }
   0x6   :  { %s164_s19 = smov [#allocation5]  }
   0x7   :  { %s29_s20 = sshll.u32 %s164_s19, 4  ;;  %s30_s20 = int_to_ptr.vmem [resolvable:$true] %s29_s20 }
   0x8   :  { %35 = dma.hbm_to_vmem [thread:$0]  %s28_s16, 256, %s30_s20, [#allocation6], %s162_s17, %s162_s17, %s163_s18  }
   0x9   :  { %155 = dma.done.wait [#allocation3], 256  }
   0xa   :  { %156 = vsyncadd [#allocation3], 4294967040 }
   0xb   :  { %157 = dma.done.wait [#allocation6], 256  }
   0xc   :  { %158 = vsyncadd [#allocation6], 4294967040  ;;  %v44_v0 = vld [vmem:[#allocation2] sm:$0xff]  ;;  %v45_v1 = vld [vmem:[#allocation2 + $0x8] sm:$0xff]  ;;  %s165_s0 = smov [#allocation7]   ;;  %s64_s23 = sshll.u32 %s201_s2, 4  ;;  %s65_s23 = int_to_ptr.hbm [resolvable:$true] %s64_s23 }
   0xd   :  { %v46_v2 = vld [vmem:[#allocation5] sm:$0xff]  ;;  %v47_v3 = vld [vmem:[#allocation5 + $0x8] sm:$0xff]  ;;  %v52_v5 = vadd.f32 %v45_v1, %v44_v0  ;;  %s62_s1 = sshll.u32 %s165_s0, 4  ;;  %s63_s1 = int_to_ptr.vmem [resolvable:$true] %s62_s1 }
   0xe   :  { %v48_v4 = vmul.f32 %v46_v2, %v44_v0  ;;  %v49_v6 = vmul.f32 %v47_v3, %v45_v1  ;;  %v55_v7 = vadd.f32 %v47_v3, %v46_v2 }
   0xf   :  { %54 = vst [vmem:[#allocation7 + $0x8] sm:$0xff] %v52_v5 }
  0x10   :  { %v50_v8 = vadd.f32 %v49_v6, %v48_v4  ;;  %57 = vst [vmem:[#allocation7 + $0x10] sm:$0xff] %v55_v7 }
  0x12   :  { %51 = vst [vmem:[#allocation7] sm:$0xff] %v50_v8 }
  0x13   :  { %70 = dma.vmem_to_hbm [thread:$0]  %s63_s1, 384, %s65_s23, [#allocation4], %s162_s17, %s162_s17, %s163_s18  }
  0x14   :  { %159 = dma.done.wait [#allocation4], 384  }
  0x15   :  { %160 = vsyncadd [#allocation4], 4294966912 }
  0x16   :  { %75 = vsyncpa [#allocation3], 1 }
  0x17   :  { %76 = vsyncpa [#allocation6], 1 }
  0x18   :  { %77 = vsyncpa [#allocation4], 1 }

</bundles_post_ra>
